<compile_context>
chip_gen: v7x
topology: tpu7x:2x2x1
jax: 0.10.0
libtpu: 0.0.40
codegen_flags: <defaults>
</compile_context>

<pallas_src>
import functools

import jax
import jax.numpy as jnp
from jax.experimental import pallas as pl
from jax.experimental.pallas import tpu as pltpu

_LANE = 128


def _round_up(x, m):
    return (x + m - 1) // m * m


def _elu(x):
    # ELU with alpha = 1.0 (torch.nn.functional.elu default).  The exp rides
    # the otherwise-idle EUP slot.  min(x, 0) keeps the inactive branch finite
    # (no inf/NaN risk in the unselected lane), and is exact for x <= 0.
    # TODO(synk): torch uses expm1; exp(x)-1 is used here as it is guaranteed
    # to lower in Mosaic (tiny f32 precision difference near 0).
    return jnp.where(x > 0, x, jnp.exp(jnp.minimum(x, 0.0)) - 1.0)


def _mlp_kernel(n_hidden, *refs):
    """One batch tile of the stacked dense MLP.

    refs = (t, w_in, b_in, [w_h_stack, b_h_stack], w_out, b_out, o_ref)
    Feature dims are pre-padded to multiples of 128 (lane width); the output
    block is narrow (n_drivers lanes) to minimize HBM writeback.
    """
    t_ref, w_in, b_in = refs[0], refs[1], refs[2]
    if n_hidden > 0:
        w_h, b_h, w_out, b_out, o_ref = refs[3:8]
    else:
        w_out, b_out, o_ref = refs[3:6]

    # Input layer is Linear(1, H): a K=1 contraction.  Do it on the VPU as a
    # broadcast multiply instead of burning a (>99% idle) MXU pass.
    u = _elu(t_ref[...] * w_in[...] + b_in[...])   # (TB,1)*(1,Hp)+(1,Hp)->(TB,Hp)

    # Hidden layers: (TB, Hp) @ (Hp, Hp) on the MXU, f32 accumulation.
    # Statically unrolled Python loop; w_h[i] / b_h[i] are static-index loads
    # from the stacked (n_hidden, Hp, Hp) / (n_hidden, 1, Hp) refs.
    for i in range(n_hidden):
        w = w_h[i]
        u = jnp.dot(u.astype(w.dtype), w,
                    preferred_element_type=jnp.float32) + b_h[i]
        u = _elu(u)

    # Output layer: (TB, Hp) @ (Hp, Dp) + (1, Dp), then store only the real
    # n_drivers lanes (narrow output block => 32x less HBM writeback than a
    # Dp=128 padded store at n_drivers=4).
    w = w_out[...]
    out = jnp.dot(u.astype(w.dtype), w,
                  preferred_element_type=jnp.float32) + b_out[...]
    nd = o_ref.shape[-1]
    o_ref[...] = out[:, :nd].astype(o_ref.dtype)


class StackedDenseTimeControlPallas:
    """Deterministically-initialized JAX/Pallas port of StackedDenseTimeControl."""

    def __init__(self, n_nodes, n_drivers, n_hidden=1, hidden_size=10,
                 use_bias=True, key=None, mxu_dtype=jnp.float32):
        del n_nodes  # unused in forward (same as the PyTorch module)
        if key is None:
            key = jax.random.PRNGKey(0)
        self.n_hidden = n_hidden
        self.hidden_size = hidden_size
        self.n_drivers = n_drivers
        self.use_bias = use_bias
        # bf16 MXU path for v6e/v7x (bf16-native MXU); f32 default keeps exact
        # parity with the f32 reference at these tiny hidden sizes, where the
        # kernel is overhead/writeback bound, not MXU bound.
        self._mxu_dtype = mxu_dtype

        self._hp = _round_up(hidden_size, _LANE)   # padded hidden width
        self._dp = _round_up(n_drivers, _LANE)     # padded output width (MXU N)

        def make_linear(key, fan_in, fan_out):
            # Mimic torch.nn.Linear default init: U(-1/sqrt(fan_in), 1/sqrt(fan_in))
            kw, kb = jax.random.split(key)
            bound = float(1.0 / (max(fan_in, 1) ** 0.5))
            # Stored as (in, out), i.e. already transposed relative to torch.
            w = jax.random.uniform(kw, (fan_in, fan_out), jnp.float32, -bound, bound)
            if use_bias:
                b = jax.random.uniform(kb, (1, fan_out), jnp.float32, -bound, bound)
            else:
                b = jnp.zeros((1, fan_out), jnp.float32)
            return w, b

        def pad2(a, rows, cols):
            # Zero padding keeps padded lanes inert: padded weight rows/cols and
            # biases are 0, and ELU(0) == 0, so they never leak into real outputs.
            return jnp.pad(a, ((0, rows - a.shape[0]), (0, cols - a.shape[1])))

        keys = jax.random.split(key, n_hidden + 2)
        # Raw (unpadded, f32) params — used by the pure-JAX reference.
        self.w_in, self.b_in = make_linear(keys[0], 1, hidden_size)
        self.hidden = [make_linear(keys[1 + i], hidden_size, hidden_size)
                       for i in range(n_hidden)]
        self.w_out, self.b_out = make_linear(keys[-1], hidden_size, n_drivers)

        # Lane-padded params passed to the kernel.  Input layer + all biases
        # stay f32 (VPU work); MXU operands optionally bf16.
        self._w_in_p = pad2(self.w_in, 1, self._hp)
        self._b_in_p = pad2(self.b_in, 1, self._hp)
        if n_hidden > 0:
            self._w_h_stack = jnp.stack(
                [pad2(w, self._hp, self._hp) for (w, _) in self.hidden]
            ).astype(self._mxu_dtype)                       # (n_hidden, Hp, Hp)
            self._b_h_stack = jnp.stack(
                [pad2(b, 1, self._hp) for (_, b) in self.hidden])  # (n_hidden, 1, Hp)
        else:
            self._w_h_stack = None
            self._b_h_stack = None
        self._w_out_p = pad2(self.w_out, self._hp, self._dp).astype(self._mxu_dtype)
        self._b_out_p = pad2(self.b_out, 1, self._dp)

    def __call__(self, t, x=None):
        del x  # unused in forward (same as the PyTorch module)
        t = jnp.asarray(t, jnp.float32)
        # multi_unsqueeze(t, 2 - ndim): append trailing singleton dims until 2-D.
        while t.ndim < 2:
            t = t[..., None]
        B = t.shape[0]

        # Batch tiling: big tiles (up to 2048 rows) amortize per-step overhead;
        # when B allows, force >= 2 grid steps so both TensorCores of a v7x
        # chip get work (batch axis is "parallel").
        if B >= 16:
            tile_b = min(2048, _round_up(pl.cdiv(B, 2), 8))
        else:
            tile_b = _round_up(max(B, 1), 8)
        b_pad = _round_up(B, tile_b)
        if b_pad != B:
            t = jnp.pad(t, ((0, b_pad - B), (0, 0)))
        grid = (b_pad // tile_b,)

        args = [t, self._w_in_p, self._b_in_p]
        if self.n_hidden > 0:
            args += [self._w_h_stack, self._b_h_stack]
        args += [self._w_out_p, self._b_out_p]

        def const_spec(a):
            # Whole array as one block, same block every grid step -> no re-DMA,
            # weights stay VMEM-resident.
            nd = a.ndim
            return pl.BlockSpec(a.shape, lambda i, _n=nd: (0,) * _n)

        in_specs = [pl.BlockSpec((tile_b, 1), lambda i: (i, 0))]
        in_specs += [const_spec(a) for a in args[1:]]
        # Narrow output block: last dim equals the full (unpadded) n_drivers.
        out_specs = pl.BlockSpec((tile_b, self.n_drivers), lambda i: (i, 0))

        hp, dp, nh = self._hp, self._dp, self.n_hidden
        param_bytes = sum(int(a.size) * a.dtype.itemsize for a in args[1:])
        cost = pl.CostEstimate(
            flops=int(2 * b_pad * hp * (1 + nh * hp + dp)),
            transcendentals=int(b_pad * hp * (nh + 1)),
            bytes_accessed=int(param_bytes + b_pad * 4
                               + b_pad * self.n_drivers * 4),
        )

        # VMEM budget: default double-buffered params + t/out tiles (lane
        # padded in VMEM) + activation temporaries, with headroom.  Kept well
        # under v7x's 64 MiB physical VMEM.
        vmem_est = (2 * param_bytes
                    + 2 * tile_b * _LANE * 4                               # t tiles
                    + 2 * tile_b * _round_up(self.n_drivers, _LANE) * 4   # out tiles
                    + 6 * tile_b * hp * 4)                                # activations
        vmem_limit = int(min(max(vmem_est + (8 << 20), 32 << 20), 48 << 20))

        kernel = functools.partial(_mlp_kernel, nh)
        out = pl.pallas_call(
            kernel,
            grid=grid,
            in_specs=in_specs,
            out_specs=out_specs,
            out_shape=jax.ShapeDtypeStruct((b_pad, self.n_drivers), jnp.float32),
            compiler_params=pltpu.CompilerParams(
                dimension_semantics=("parallel",),
                vmem_limit_bytes=vmem_limit),
            cost_estimate=cost,
        )(*args)
        # Slice off batch padding (output columns are already unpadded).
        return out[:B]


def _reference_forward(model, t):
    """Plain-JAX reference (unpadded f32 weights) for correctness checking."""
    t = jnp.asarray(t, jnp.float32)
    while t.ndim < 2:
        t = t[..., None]
    u = _elu(t @ model.w_in + model.b_in)
    for w_h, b_h in model.hidden:
        u = _elu(u @ w_h + b_h)
    return u @ model.w_out + model.b_out


if __name__ == "__main__":
    key = jax.random.PRNGKey(0)
    k_t, k_t2, k_x, k_params = jax.random.split(key, 4)

    # Small shapes consistent with the module: batch of scalar times + node states.
    batch = 8
    n_nodes = 16
    n_drivers = 4
    hidden_size = 32
    n_hidden = 2

    t = jax.random.uniform(k_t, (batch,), jnp.float32)          # batch of scalar times
    x = jax.random.normal(k_x, (batch, n_nodes), jnp.float32)   # unused by forward

    model = StackedDenseTimeControlPallas(
        n_nodes=n_nodes, n_drivers=n_drivers, n_hidden=n_hidden,
        hidden_size=hidden_size, use_bias=True, key=k_params)

    # --- check 1: small batch (single grid step), f32 MXU ---
    out = jax.block_until_ready(model(t, x))
    ref = _reference_forward(model, t)
    assert out.shape == (batch, n_drivers), out.shape
    assert jnp.allclose(out, ref, atol=1e-4, rtol=1e-4), (out, ref)

    # --- check 2: larger batch exercising the multi-step "parallel" grid ---
    batch2 = 200
    t2 = jax.random.uniform(k_t2, (batch2,), jnp.float32)
    out2 = jax.block_until_ready(model(t2))
    ref2 = _reference_forward(model, t2)
    assert out2.shape == (batch2, n_drivers), out2.shape
    assert jnp.allclose(out2, ref2, atol=1e-4, rtol=1e-4), float(
        jnp.max(jnp.abs(out2 - ref2)))

    # --- check 3: bf16 MXU path (same deterministic params via same key) ---
    model_bf16 = StackedDenseTimeControlPallas(
        n_nodes=n_nodes, n_drivers=n_drivers, n_hidden=n_hidden,
        hidden_size=hidden_size, use_bias=True, key=k_params,
        mxu_dtype=jnp.bfloat16)
    out_bf16 = jax.block_until_ready(model_bf16(t, x))
    assert out_bf16.shape == (batch, n_drivers), out_bf16.shape
    assert bool(jnp.all(jnp.isfinite(out_bf16)))
    assert jnp.allclose(out_bf16, ref, atol=5e-2, rtol=5e-2), (out_bf16, ref)

    print("KERNEL_OK")
</pallas_src>

<mosaic_0001>
module attributes {stable_mosaic.version = 11 : i64} {
  func.func @_mlp_kernel(%arg0: i32, %arg1: memref<8x1xf32, #tpu.memory_space<vmem>>, %arg2: memref<1x128xf32, #tpu.memory_space<vmem>>, %arg3: memref<1x128xf32, #tpu.memory_space<vmem>>, %arg4: memref<2x128x128xf32, #tpu.memory_space<vmem>>, %arg5: memref<2x1x128xf32, #tpu.memory_space<vmem>>, %arg6: memref<128x128xf32, #tpu.memory_space<vmem>>, %arg7: memref<1x128xf32, #tpu.memory_space<vmem>>, %arg8: memref<8x4xf32, #tpu.memory_space<vmem>>) attributes {dimension_semantics = [#tpu.dimension_semantics<parallel>], iteration_bounds = array<i64: 1>, scalar_prefetch = 0 : i64, scratch_operands = 0 : i64, tpu.core_type = #tpu.core_type<tc>, window_params = [{transform_indices = @transform_0, window_bounds = array<i64: 8, 1>}, {pipeline_mode = #tpu.pipeline_mode<synchronous>, transform_indices = @transform_1, window_bounds = array<i64: 1, 128>}, {pipeline_mode = #tpu.pipeline_mode<synchronous>, transform_indices = @transform_2, window_bounds = array<i64: 1, 128>}, {pipeline_mode = #tpu.pipeline_mode<synchronous>, transform_indices = @transform_3, window_bounds = array<i64: 2, 128, 128>}, {pipeline_mode = #tpu.pipeline_mode<synchronous>, transform_indices = @transform_4, window_bounds = array<i64: 2, 1, 128>}, {pipeline_mode = #tpu.pipeline_mode<synchronous>, transform_indices = @transform_5, window_bounds = array<i64: 128, 128>}, {pipeline_mode = #tpu.pipeline_mode<synchronous>, transform_indices = @transform_6, window_bounds = array<i64: 1, 128>}, {transform_indices = @transform_7, window_bounds = array<i64: 8, 4>}]} {
    %c0 = arith.constant 0 : index
    %c0_0 = arith.constant 0 : index
    %0 = vector.load %arg1[%c0, %c0_0] : memref<8x1xf32, #tpu.memory_space<vmem>>, vector<8x1xf32>
    %c0_1 = arith.constant 0 : index
    %c0_2 = arith.constant 0 : index
    %1 = vector.load %arg2[%c0_1, %c0_2] : memref<1x128xf32, #tpu.memory_space<vmem>>, vector<1x128xf32>
    %2 = vector.broadcast %0 : vector<8x1xf32> to vector<8x128xf32>
    %3 = vector.broadcast %1 : vector<1x128xf32> to vector<8x128xf32>
    %4 = arith.mulf %2, %3 : vector<8x128xf32>
    %c0_3 = arith.constant 0 : index
    %c0_4 = arith.constant 0 : index
    %5 = vector.load %arg3[%c0_3, %c0_4] : memref<1x128xf32, #tpu.memory_space<vmem>>, vector<1x128xf32>
    %6 = vector.broadcast %5 : vector<1x128xf32> to vector<8x128xf32>
    %7 = arith.addf %4, %6 : vector<8x128xf32>
    %cst = arith.constant 0.000000e+00 : f32
    %8 = vector.broadcast %cst : f32 to vector<8x128xf32>
    %9 = arith.cmpf ogt, %7, %8 : vector<8x128xf32>
    %cst_5 = arith.constant 0.000000e+00 : f32
    %10 = vector.broadcast %cst_5 : f32 to vector<8x128xf32>
    %11 = arith.minimumf %7, %10 : vector<8x128xf32>
    %12 = math.exp %11 : vector<8x128xf32>
    %cst_6 = arith.constant 1.000000e+00 : f32
    %13 = vector.broadcast %cst_6 : f32 to vector<8x128xf32>
    %14 = arith.subf %12, %13 : vector<8x128xf32>
    %15 = arith.select %9, %7, %14 : vector<8x128xi1>, vector<8x128xf32>
    %c0_7 = arith.constant 0 : index
    %c0_8 = arith.constant 0 : index
    %c0_9 = arith.constant 0 : index
    %16 = vector.load %arg4[%c0_7, %c0_8, %c0_9] : memref<2x128x128xf32, #tpu.memory_space<vmem>>, vector<1x128x128xf32>
    %17 = vector.shape_cast %16 : vector<1x128x128xf32> to vector<128x128xf32>
    %cst_10 = arith.constant dense<0.000000e+00> : vector<8x128xf32>
    %18 = tpu.matmul %15, %17, %cst_10 {dimension_numbers = #tpu.dot_dimension_numbers<[1], [0], [0], [1], [0, 0, 1, 1], [], []>} : vector<8x128xf32>, vector<128x128xf32>, vector<8x128xf32> -> vector<8x128xf32>
    %c0_11 = arith.constant 0 : index
    %c0_12 = arith.constant 0 : index
    %c0_13 = arith.constant 0 : index
    %19 = vector.load %arg5[%c0_11, %c0_12, %c0_13] : memref<2x1x128xf32, #tpu.memory_space<vmem>>, vector<1x1x128xf32>
    %20 = vector.shape_cast %19 : vector<1x1x128xf32> to vector<1x128xf32>
    %21 = vector.broadcast %20 : vector<1x128xf32> to vector<8x128xf32>
    %22 = arith.addf %18, %21 : vector<8x128xf32>
    %cst_14 = arith.constant 0.000000e+00 : f32
    %23 = vector.broadcast %cst_14 : f32 to vector<8x128xf32>
    %24 = arith.cmpf ogt, %22, %23 : vector<8x128xf32>
    %cst_15 = arith.constant 0.000000e+00 : f32
    %25 = vector.broadcast %cst_15 : f32 to vector<8x128xf32>
    %26 = arith.minimumf %22, %25 : vector<8x128xf32>
    %27 = math.exp %26 : vector<8x128xf32>
    %cst_16 = arith.constant 1.000000e+00 : f32
    %28 = vector.broadcast %cst_16 : f32 to vector<8x128xf32>
    %29 = arith.subf %27, %28 : vector<8x128xf32>
    %30 = arith.select %24, %22, %29 : vector<8x128xi1>, vector<8x128xf32>
    %c1 = arith.constant 1 : index
    %c0_17 = arith.constant 0 : index
    %c0_18 = arith.constant 0 : index
    %31 = vector.load %arg4[%c1, %c0_17, %c0_18] : memref<2x128x128xf32, #tpu.memory_space<vmem>>, vector<1x128x128xf32>
    %32 = vector.shape_cast %31 : vector<1x128x128xf32> to vector<128x128xf32>
    %cst_19 = arith.constant dense<0.000000e+00> : vector<8x128xf32>
    %33 = tpu.matmul %30, %32, %cst_19 {dimension_numbers = #tpu.dot_dimension_numbers<[1], [0], [0], [1], [0, 0, 1, 1], [], []>} : vector<8x128xf32>, vector<128x128xf32>, vector<8x128xf32> -> vector<8x128xf32>
    %c1_20 = arith.constant 1 : index
    %c0_21 = arith.constant 0 : index
    %c0_22 = arith.constant 0 : index
    %34 = vector.load %arg5[%c1_20, %c0_21, %c0_22] : memref<2x1x128xf32, #tpu.memory_space<vmem>>, vector<1x1x128xf32>
    %35 = vector.shape_cast %34 : vector<1x1x128xf32> to vector<1x128xf32>
    %36 = vector.broadcast %35 : vector<1x128xf32> to vector<8x128xf32>
    %37 = arith.addf %33, %36 : vector<8x128xf32>
    %cst_23 = arith.constant 0.000000e+00 : f32
    %38 = vector.broadcast %cst_23 : f32 to vector<8x128xf32>
    %39 = arith.cmpf ogt, %37, %38 : vector<8x128xf32>
    %cst_24 = arith.constant 0.000000e+00 : f32
    %40 = vector.broadcast %cst_24 : f32 to vector<8x128xf32>
    %41 = arith.minimumf %37, %40 : vector<8x128xf32>
    %42 = math.exp %41 : vector<8x128xf32>
    %cst_25 = arith.constant 1.000000e+00 : f32
    %43 = vector.broadcast %cst_25 : f32 to vector<8x128xf32>
    %44 = arith.subf %42, %43 : vector<8x128xf32>
    %45 = arith.select %39, %37, %44 : vector<8x128xi1>, vector<8x128xf32>
    %c0_26 = arith.constant 0 : index
    %c0_27 = arith.constant 0 : index
    %46 = vector.load %arg6[%c0_26, %c0_27] : memref<128x128xf32, #tpu.memory_space<vmem>>, vector<128x128xf32>
    %cst_28 = arith.constant dense<0.000000e+00> : vector<8x128xf32>
    %47 = tpu.matmul %45, %46, %cst_28 {dimension_numbers = #tpu.dot_dimension_numbers<[1], [0], [0], [1], [0, 0, 1, 1], [], []>} : vector<8x128xf32>, vector<128x128xf32>, vector<8x128xf32> -> vector<8x128xf32>
    %c0_29 = arith.constant 0 : index
    %c0_30 = arith.constant 0 : index
    %48 = vector.load %arg7[%c0_29, %c0_30] : memref<1x128xf32, #tpu.memory_space<vmem>>, vector<1x128xf32>
    %49 = vector.broadcast %48 : vector<1x128xf32> to vector<8x128xf32>
    %50 = arith.addf %47, %49 : vector<8x128xf32>
    %51 = vector.extract_strided_slice %50 {offsets = [0, 0], sizes = [8, 4], strides = [1, 1]} : vector<8x128xf32> to vector<8x4xf32>
    %c0_31 = arith.constant 0 : index
    %c0_32 = arith.constant 0 : index
    %52 = vector.load %arg8[%c0_31, %c0_32] : memref<8x4xf32, #tpu.memory_space<vmem>>, vector<8x4xf32>
    tpu.vector_store %arg8[%c0_31, %c0_32], %51 {strides = array<i32>} : memref<8x4xf32, #tpu.memory_space<vmem>>, vector<8x4xf32>,
    return
  }
  func.func @transform_0(%arg0: i32) -> (i32, i32) {
    %c0_i32 = arith.constant 0 : i32
    %c0_i32_0 = arith.constant 0 : i32
    return %arg0, %c0_i32 : i32, i32
  }
  func.func @transform_1(%arg0: i32) -> (i32, i32) {
    %c0_i32 = arith.constant 0 : i32
    %c0_i32_0 = arith.constant 0 : i32
    %c0_i32_1 = arith.constant 0 : i32
    return %c0_i32, %c0_i32_0 : i32, i32
  }
  func.func @transform_2(%arg0: i32) -> (i32, i32) {
    %c0_i32 = arith.constant 0 : i32
    %c0_i32_0 = arith.constant 0 : i32
    %c0_i32_1 = arith.constant 0 : i32
    return %c0_i32, %c0_i32_0 : i32, i32
  }
  func.func @transform_3(%arg0: i32) -> (i32, i32, i32) {
    %c0_i32 = arith.constant 0 : i32
    %c0_i32_0 = arith.constant 0 : i32
    %c0_i32_1 = arith.constant 0 : i32
    %c0_i32_2 = arith.constant 0 : i32
    return %c0_i32, %c0_i32_0, %c0_i32_1 : i32, i32, i32
  }
  func.func @transform_4(%arg0: i32) -> (i32, i32, i32) {
    %c0_i32 = arith.constant 0 : i32
    %c0_i32_0 = arith.constant 0 : i32
    %c0_i32_1 = arith.constant 0 : i32
    %c0_i32_2 = arith.constant 0 : i32
    return %c0_i32, %c0_i32_0, %c0_i32_1 : i32, i32, i32
  }
  func.func @transform_5(%arg0: i32) -> (i32, i32) {
    %c0_i32 = arith.constant 0 : i32
    %c0_i32_0 = arith.constant 0 : i32
    %c0_i32_1 = arith.constant 0 : i32
    return %c0_i32, %c0_i32_0 : i32, i32
  }
  func.func @transform_6(%arg0: i32) -> (i32, i32) {
    %c0_i32 = arith.constant 0 : i32
    %c0_i32_0 = arith.constant 0 : i32
    %c0_i32_1 = arith.constant 0 : i32
    return %c0_i32, %c0_i32_0 : i32, i32
  }
  func.func @transform_7(%arg0: i32) -> (i32, i32) {
    %c0_i32 = arith.constant 0 : i32
    %c0_i32_0 = arith.constant 0 : i32
    return %arg0, %c0_i32 : i32, i32
  }
}

</mosaic_0001>

<bundles_post_ra>
// kernel: tpu_custom_call.1
= control target key start
LH: loop header
LB: loop body
LE: loop exit
PB: predicated region body
PF: predicated region fallthrough
CT: control target
= control target key end

     0   :  { %12 = vsyncpa [#allocation3], 0  ;;  %s803_s0 = inlined_call_operand.vmem [shape: f32[8,1], index: 0, kind: input, shape index: {}]   ;;  %s804_s1 = inlined_call_operand.vmem [shape: f32[1,128], index: 1, kind: input, shape index: {}]   ;;  %s805_s2 = inlined_call_operand.vmem [shape: f32[1,128], index: 2, kind: input, shape index: {}]   ;;  %s806_s3 = inlined_call_operand.hbm [shape: f32[2,128,128], index: 3, kind: input, shape index: {}]   ;;  %s807_s4 = inlined_call_operand.vmem [shape: f32[2,1,128], index: 4, kind: input, shape index: {}]   ;;  %s808_s5 = inlined_call_operand.hbm [shape: f32[128,128], index: 5, kind: input, shape index: {}]   ;;  %s809_s6 = inlined_call_operand.vmem [shape: f32[1,128], index: 6, kind: input, shape index: {}]   ;;  %s810_s7 = inlined_call_operand.vmem [shape: f32[8,4], index: 7, kind: output, shape index: {}]  }
   0x1   :  { %13 = vsyncpa [#allocation5], 0  ;;  %s683_s24 = smov [#allocation2]   ;;  %s635_s28 = scalar_lea.hbm %s806_s3, 4096 }
   0x2   :  { %s25_s25 = sshll.u32 %s683_s24, 4  ;;  %p636_p0 = scmp.ne.s32.totalorder %s806_s3, %s635_s28  ;;  %s26_s25 = int_to_ptr.vmem [resolvable:$true] %s25_s25 }
   0x3   :  { %p639_p1 = scmp.lt.u32.totalorder %s635_s28, %s806_s3 }
   0x5   :  { %p641_p2 = pnand %p639_p1, %p636_p0 }
   0x7   :  { %644 = shalt.err (!%p641_p2)
}
   0x8   :  { %s645_s10 = scalar_lea.vmem %s26_s25, 4096  ;;  %p650_p4 = scmp.lt.s32.totalorder %s26_s25, %s26_s25 }
   0x9   :  { %p646_p3 = scmp.ne.s32.totalorder %s26_s25, %s645_s10  ;;  %p651_p5 = scmp.lt.s32.totalorder %s645_s10, %s645_s10 }
   0xb   :  { %p652_p6 = por %p651_p5, %p650_p4 }
   0xd   :  { %p653_p7 = pnand %p652_p6, %p646_p3 }
   0xf   :  { %656 = shalt.err (!%p653_p7)
}
  0x10   :  { %s684_s11 = smov 128   ;;  %s685_s12 = smov 8  }
  0x11   :  { %31 = dma.hbm_to_vmem [thread:$0]  %s806_s3, 4096, %s26_s25, [#allocation3], %s684_s11, %s684_s11, %s685_s12  }
  0x12   :  { %s686_s15 = smov [#allocation4]   ;;  %s657_s19 = scalar_lea.hbm %s808_s5, 2048 }
  0x13   :  { %s39_s16 = sshll.u32 %s686_s15, 4  ;;  %p658_p8 = scmp.ne.s32.totalorder %s808_s5, %s657_s19  ;;  %s40_s16 = int_to_ptr.vmem [resolvable:$true] %s39_s16 }
  0x14   :  { %p661_p9 = scmp.lt.u32.totalorder %s657_s19, %s808_s5 }
  0x16   :  { %p663_p10 = pnand %p661_p9, %p658_p8 }
  0x18   :  { %666 = shalt.err (!%p663_p10)
}
  0x19   :  { %s667_s24 = scalar_lea.vmem %s40_s16, 2048  ;;  %p672_p12 = scmp.lt.s32.totalorder %s40_s16, %s40_s16 }
  0x1a   :  { %p668_p11 = scmp.ne.s32.totalorder %s40_s16, %s667_s24  ;;  %p673_p13 = scmp.lt.s32.totalorder %s667_s24, %s667_s24 }
  0x1c   :  { %p674_p0 = por %p673_p13, %p672_p12 }
  0x1e   :  { %p675_p1 = pnand %p674_p0, %p668_p11 }
  0x20   :  { %678 = shalt.err (!%p675_p1)
}
  0x21   :  { %45 = dma.hbm_to_vmem [thread:$0]  %s808_s5, 2048, %s40_s16, [#allocation5], %s684_s11, %s684_s11, %s685_s12  }
  0x22   :  { %679 = dma.done.wait [#allocation3], 4096  }
  0x23   :  { %680 = vsyncadd [#allocation3], 4294963200 }
  0x24   :  { %681 = dma.done.wait [#allocation5], 2048  }
  0x25   :  { %682 = vsyncadd [#allocation5], 4294965248  ;;  %v687_v0 = vmov 0   ;;  %v688_v1 = vmov 0.0|0.0   ;;  %v54_v2 = vld [vmem:[%s803_s0] sm:$0xff]  ;;  %v83_v4 = vld [vmem:[#allocation2 + $0x8] sm:$0xff] }
  0x26   :  { %628 = vset.pattern.permute.xlu0 %v687_v0  ;;  %548 = vmatprep.subr.bf16.mxu0 %v688_v1  ;;  %v82_v3 = vld [vmem:[#allocation2] sm:$0xff]  ;;  %v84_v6 = vld [vmem:[#allocation2 + $0x10] sm:$0xff]  ;;  %v85_v7 = vld [vmem:[#allocation2 + $0x18] sm:$0xff]  ;;  %vm689_vm0 = vmmov 0   ;;  %v690_v14 = vmov 0.0   ;;  %vm375_vm4 = vcmask 31744  }
  0x27   :  { %572 = vmatprep.subr.bf16.mxu1 %v688_v1  ;;  %58 = vperm.xlu0 %628, %v54_v2   ;;  %v549_v5 = vpack.c.bf16 %v83_v4, %v82_v3  ;;  %v552_v8 = vpack.c.bf16 %v85_v7, %v84_v6  ;;  %v86_v9 = vld [vmem:[#allocation2 + $0x20] sm:$0xff]  ;;  %v87_v10 = vld [vmem:[#allocation2 + $0x28] sm:$0xff]  ;;  %v88_v12 = vld [vmem:[#allocation2 + $0x30] sm:$0xff] }
  0x28   :  { %v555_v11 = vpack.c.bf16 %v87_v10, %v86_v9  ;;  %v89_v13 = vld [vmem:[#allocation2 + $0x38] sm:$0xff]  ;;  %475 = vmatprep.mubr.msk.f32.mxu0 %vm689_vm0, %v690_v14  ;;  %510 = vmatprep.mubr.msk.f32.mxu1 %vm689_vm0, %v690_v14  ;;  %v90_v16 = vld [vmem:[#allocation2 + $0x40] sm:$0xff]  ;;  %v91_v17 = vld [vmem:[#allocation2 + $0x48] sm:$0xff] }
  0x29   :  { %550 = vmatpush3.bf16.msra.mxu0 %v549_v5  ;;  %v558_v15 = vpack.c.bf16 %v89_v13, %v88_v12  ;;  %v561_v18 = vpack.c.bf16 %v91_v17, %v90_v16  ;;  %v92_v19 = vld [vmem:[#allocation2 + $0x50] sm:$0xff]  ;;  %v93_v20 = vld [vmem:[#allocation2 + $0x58] sm:$0xff]  ;;  %v94_v22 = vld [vmem:[#allocation2 + $0x60] sm:$0xff] }
  0x2a   :  { %551 = vmatprep.subr.bf16.mxu0 %v688_v1  ;;  %v564_v21 = vpack.c.bf16 %v93_v20, %v92_v19  ;;  %v95_v23 = vld [vmem:[#allocation2 + $0x68] sm:$0xff]  ;;  %v182_v25 = vld [vmem:[#allocation2 + $0x80] sm:$0xff]  ;;  %v184_v27 = vld [vmem:[#allocation2 + $0x90] sm:$0xff] }
  0x2b   :  { %v567_v24 = vpack.c.bf16 %v95_v23, %v94_v22  ;;  %v183_v26 = vld [vmem:[#allocation2 + $0x88] sm:$0xff]  ;;  %v96_v28 = vld [vmem:[#allocation2 + $0x70] sm:$0xff]  ;;  %v97_v29 = vld [vmem:[#allocation2 + $0x78] sm:$0xff] }
  0x2c   :  { %v573_v30 = vpack.c.bf16 %v183_v26, %v182_v25  ;;  %v185_v31 = vld [vmem:[#allocation2 + $0x98] sm:$0xff]  ;;  %v570_v33 = vpack.c.bf16 %v97_v29, %v96_v28  ;;  %v186_v34 = vld [vmem:[#allocation2 + $0xa0] sm:$0xff]  ;;  %v187_v35 = vld [vmem:[#allocation2 + $0xa8] sm:$0xff] }
  0x2d   :  { %553 = vmatpush3.bf16.msra.mxu0 %v552_v8  ;;  %v576_v32 = vpack.c.bf16 %v185_v31, %v184_v27  ;;  %v579_v36 = vpack.c.bf16 %v187_v35, %v186_v34  ;;  %v383_v37 = vld [vmem:[%s804_s1] ss:$0 sm:$0xff]  ;;  %v188_v47 = vld [vmem:[#allocation2 + $0xb0] sm:$0xff]  ;;  %v189_v48 = vld [vmem:[#allocation2 + $0xb8] sm:$0xff] }
  0x2e   :  { %554 = vmatprep.subr.bf16.mxu0 %v688_v1  ;;  %574 = vmatpush3.bf16.msra.mxu1 %v573_v30  ;;  %v384_v38 = vld [vmem:[%s805_s2] ss:$0 sm:$0xff]  ;;  %v582_v49 = vpack.c.bf16 %v189_v48, %v188_v47  ;;  %v191_v51 = vld [vmem:[#allocation2 + $0xc8] sm:$0xff]  ;;  %v192_v53 = vld [vmem:[#allocation2 + $0xd0] sm:$0xff] }
  0x2f   :  { %575 = vmatprep.subr.bf16.mxu1 %v688_v1  ;;  %v190_v50 = vld [vmem:[#allocation2 + $0xc0] sm:$0xff]  ;;  %v193_v54 = vld [vmem:[#allocation2 + $0xd8] sm:$0xff]  ;;  %v195_v57 = vld [vmem:[#allocation2 + $0xe8] sm:$0xff] }
  0x30   :  { %v585_v52 = vpack.c.bf16 %v191_v51, %v190_v50  ;;  %v194_v55 = vld [vmem:[#allocation2 + $0xe0] sm:$0xff]  ;;  %v588_v56 = vpack.c.bf16 %v193_v54, %v192_v53  ;;  %v196_v59 = vld [vmem:[#allocation2 + $0xf0] sm:$0xff]  ;;  %v197_v60 = vld [vmem:[#allocation2 + $0xf8] sm:$0xff] }
  0x31   :  { %556 = vmatpush3.bf16.msra.mxu0 %v555_v11  ;;  %v591_v58 = vpack.c.bf16 %v195_v57, %v194_v55  ;;  %v594_v61 = vpack.c.bf16 %v197_v60, %v196_v59  ;;  %v282_v62 = vld [vmem:[#allocation4] sm:$0xff]  ;;  %v283_v63 = vld [vmem:[#allocation4 + $0x8] sm:$0xff]  ;;  %v284_v0 = vld [vmem:[#allocation4 + $0x10] sm:$0xff] }
  0x32   :  { %557 = vmatprep.subr.bf16.mxu0 %v688_v1  ;;  %577 = vmatpush3.bf16.msra.mxu1 %v576_v32  ;;  %v597_v2 = vpack.c.bf16 %v283_v63, %v282_v62  ;;  %v285_v3 = vld [vmem:[#allocation4 + $0x18] sm:$0xff]  ;;  %v286_v5 = vld [vmem:[#allocation4 + $0x20] sm:$0xff]  ;;  %v287_v6 = vld [vmem:[#allocation4 + $0x28] sm:$0xff] }
  0x33   :  { %578 = vmatprep.subr.bf16.mxu1 %v688_v1  ;;  %v600_v4 = vpack.c.bf16 %v285_v3, %v284_v0  ;;  %v603_v7 = vpack.c.bf16 %v287_v6, %v286_v5  ;;  %v386_v8 = vld [vmem:[%s807_s4] ss:$0 sm:$0xff]  ;;  %v288_v17 = vld [vmem:[#allocation4 + $0x30] sm:$0xff]  ;;  %v295_v27 = vld [vmem:[#allocation4 + $0x68] sm:$0xff] }
  0x34   :  { %v290_v20 = vld [vmem:[#allocation4 + $0x40] sm:$0xff]  ;;  %v292_v23 = vld [vmem:[#allocation4 + $0x50] sm:$0xff]  ;;  %v297_v30 = vld [vmem:[#allocation4 + $0x78] sm:$0xff] }
  0x35   :  { %559 = vmatpush3.bf16.msra.mxu0 %v558_v15  ;;  %v294_v25 = vld [vmem:[#allocation4 + $0x60] sm:$0xff]  ;;  %v296_v29 = vld [vmem:[#allocation4 + $0x70] sm:$0xff] }
  0x36   :  { %560 = vmatprep.subr.bf16.mxu0 %v688_v1  ;;  %580 = vmatpush3.bf16.msra.mxu1 %v579_v36  ;;  %v615_v28 = vpack.c.bf16 %v295_v27, %v294_v25  ;;  %v618_v31 = vpack.c.bf16 %v297_v30, %v296_v29  ;;  %v389_v32 = vld [vmem:[%s807_s4 + $0x1] ss:$0 sm:$0xff] }
  0x37   :  { %581 = vmatprep.subr.bf16.mxu1 %v688_v1 }
  0x39   :  { %562 = vmatpush3.bf16.msra.mxu0 %v561_v18  ;;  %v289_v18 = vld [vmem:[#allocation4 + $0x38] sm:$0xff] }
  0x3a   :  { %563 = vmatprep.subr.bf16.mxu0 %v688_v1  ;;  %583 = vmatpush3.bf16.msra.mxu1 %v582_v49  ;;  %v606_v19 = vpack.c.bf16 %v289_v18, %v288_v17 }
  0x3b   :  { %584 = vmatprep.subr.bf16.mxu1 %v688_v1 }
  0x3d   :  { %565 = vmatpush3.bf16.msra.mxu0 %v564_v21  ;;  %v291_v21 = vld [vmem:[#allocation4 + $0x48] sm:$0xff] }
  0x3e   :  { %566 = vmatprep.subr.bf16.mxu0 %v688_v1  ;;  %586 = vmatpush3.bf16.msra.mxu1 %v585_v52  ;;  %v609_v22 = vpack.c.bf16 %v291_v21, %v290_v20 }
  0x3f   :  { %587 = vmatprep.subr.bf16.mxu1 %v688_v1 }
  0x41   :  { %568 = vmatpush3.bf16.msra.mxu0 %v567_v24  ;;  %v293_v24 = vld [vmem:[#allocation4 + $0x58] sm:$0xff] }
  0x42   :  { %569 = vmatprep.subr.bf16.mxu0 %v688_v1  ;;  %589 = vmatpush3.bf16.msra.mxu1 %v588_v56  ;;  %v612_v26 = vpack.c.bf16 %v293_v24, %v292_v23 }
  0x43   :  { %590 = vmatprep.subr.bf16.mxu1 %v688_v1 }
  0x45   :  { %571 = vmatpush3.bf16.msra.mxu0 %v570_v33 }
  0x46   :  { %596 = vmatprep.subr.bf16.mxu0 %v688_v1  ;;  %592 = vmatpush3.bf16.msra.mxu1 %v591_v58 }
  0x47   :  { %593 = vmatprep.subr.bf16.mxu1 %v688_v1 }
  0x4a   :  { %595 = vmatpush3.bf16.msra.mxu1 %v594_v61 }
  0xa6   :  { %v59_v39 = vpop.permute.xlu0 %58 }
  0xa7   :  { %v67_v40 = vmul.f32 %v383_v37, %v59_v39 }
  0xa9   :  { %v75_v41 = vadd.f32 %v384_v38, %v67_v40 }
  0xab   :  { %v77_v42 = vmin.f32 %v75_v41, 0.0  ;;  %vm76_vm1 = vcmp.gt.f32.partialorder %v75_v41, 0.0 }
  0xad   :  { %v78_v43 = vmul.f32 1.442695, %v77_v42 }
  0xaf   :  { %629 = vpow2.f32 %v78_v43 }
  0xb9   :  { %v630_v44 = vpop.eup %629 }
  0xba   :  { %v385_v45 = vadd.f32 -1.0, %v630_v44 }
  0xbc   :  { %v81_v46 = vsel %vm76_vm1, %v75_v41, %v385_v45 }
  0xbd   :  { %476 = vmatmul.mubr.f32.vlgmr.msra.gmra.mrb[0].mxu0 %v81_v46 }
  0xbe   :  { %545 = vmatprep.mubr.msk.f32.mxu0 %vm689_vm0, %v690_v14  ;;  %598 = vmatpush3.bf16.msra.mxu0 %v597_v2 }
  0xbf   :  { %599 = vmatprep.subr.bf16.mxu0 %v688_v1 }
  0xc2   :  { %601 = vmatpush3.bf16.msra.mxu0 %v600_v4 }
  0xc3   :  { %602 = vmatprep.subr.bf16.mxu0 %v688_v1 }
  0xc6   :  { %604 = vmatpush3.bf16.msra.mxu0 %v603_v7 }
  0xc7   :  { %605 = vmatprep.subr.bf16.mxu0 %v688_v1 }
  0xca   :  { %607 = vmatpush3.bf16.msra.mxu0 %v606_v19 }
  0xcb   :  { %608 = vmatprep.subr.bf16.mxu0 %v688_v1 }
  0xce   :  { %610 = vmatpush3.bf16.msra.mxu0 %v609_v22 }
  0xcf   :  { %611 = vmatprep.subr.bf16.mxu0 %v688_v1 }
  0xd2   :  { %613 = vmatpush3.bf16.msra.mxu0 %v612_v26 }
  0xd3   :  { %614 = vmatprep.subr.bf16.mxu0 %v688_v1 }
  0xd6   :  { %616 = vmatpush3.bf16.msra.mxu0 %v615_v28 }
  0xd7   :  { %617 = vmatprep.subr.bf16.mxu0 %v688_v1  ;;  %v391_v1 = vld [vmem:[%s809_s6] ss:$0 sm:$0xff] }
  0xda   :  { %619 = vmatpush3.bf16.msra.mxu0 %v618_v31 }
 0x190   :  { %v171_v9 = vpop.f32.mrb[0].mxu0 }
 0x191   :  { %v172_v10 = vadd.f32 %v386_v8, %v171_v9  ;;  %v477_v11 = vpop.f32.mrb[1].mxu0 }
 0x193   :  { %v176_v12 = vmin.f32 %v172_v10, 0.0  ;;  %vm175_vm2 = vcmp.gt.f32.partialorder %v172_v10, 0.0 }
 0x195   :  { %v177_v13 = vmul.f32 1.442695, %v176_v12 }
 0x197   :  { %631 = vpow2.f32 %v177_v13 }
 0x1a1   :  { %v632_v14 = vpop.eup %631 }
 0x1a2   :  { %v387_v15 = vadd.f32 -1.0, %v632_v14 }
 0x1a4   :  { %v180_v16 = vsel %vm175_vm2, %v172_v10, %v387_v15 }
 0x1a5   :  { %511 = vmatmul.mubr.f32.vlgmr.msra.gmra.mrb[0].mxu1 %v180_v16 }
 0x278   :  { %v272_v33 = vpop.f32.mrb[0].mxu1 }
 0x279   :  { %v273_v34 = vadd.f32 %v389_v32, %v272_v33  ;;  %v512_v35 = vpop.f32.mrb[1].mxu1 }
 0x27b   :  { %v277_v36 = vmin.f32 %v273_v34, 0.0  ;;  %vm276_vm3 = vcmp.gt.f32.partialorder %v273_v34, 0.0 }
 0x27d   :  { %v278_v37 = vmul.f32 1.442695, %v277_v36 }
 0x27f   :  { %633 = vpow2.f32 %v278_v37 }
 0x289   :  { %v634_v38 = vpop.eup %633 }
 0x28a   :  { %v390_v39 = vadd.f32 -1.0, %v634_v38 }
 0x28c   :  { %v281_v40 = vsel %vm276_vm3, %v273_v34, %v390_v39 }
 0x28d   :  { %546 = vmatmul.mubr.f32.vlgmr.msra.gmra.mrb[2].mxu0 %v281_v40 }
 0x360   :  { %v371_v41 = vpop.f32.mrb[2].mxu0 }
 0x361   :  { %v372_v42 = vadd.f32 %v391_v1, %v371_v41  ;;  %v547_v43 = vpop.f32.mrb[3].mxu0 }
 0x363   :  { %376 = vst.msk [vmem:[%s810_s7] sm:$0xff] %vm375_vm4, %v372_v42 }
 0x364   :  { %381 = vsyncpa [#allocation3], 1 }
 0x365   :  { %382 = vsyncpa [#allocation5], 1 }

</bundles_post_ra>
